<compile_context>
chip_gen: v5e
topology: v5e:2x2
jax: 0.10.0
libtpu: 0.0.40
codegen_flags: <defaults>
</compile_context>

<pallas_src>
import functools

import numpy as np
import jax
import jax.numpy as jnp
from jax.experimental import pallas as pl
from jax.experimental.pallas import tpu as pltpu

_LEAKY_SLOPE = 0.01  # PyTorch nn.LeakyReLU default negative_slope


def _conv_out(size, k, s, p):
    return (size + 2 * p - k) // s + 1


# ----------------------------- Pallas kernel -----------------------------

def _prior_encoder_kernel(x_ref,
                          s1_ref, t1_ref, b1_ref,
                          s2_ref, t2_ref, b2_ref,
                          s3_ref, t3_ref, b3_ref,
                          o_ref):
    """Full PriorEncoderNet forward for one batch element, resident in VMEM."""

    def conv(h_bf16, s_ref, t_ref, b_ref, leaky):
        kh = s_ref.shape[0]          # number of kernel rows (taps in H)
        oh = s_ref.shape[1]          # output rows
        oc = t_ref.shape[2]          # output lanes = OW * Cout
        acc = jnp.zeros((oh, oc), jnp.float32)
        for di in range(kh):         # static, unrolled tap loop
            # stride + H zero-padding via a 0/1 selection matmul (MXU),
            # avoiding strided sublane loads entirely.
            rows = jnp.dot(s_ref[di], h_bf16,
                           preferred_element_type=jnp.float32)
            acc = acc + jnp.dot(rows.astype(jnp.bfloat16), t_ref[di],
                                preferred_element_type=jnp.float32)
        acc = acc + b_ref[...]       # (1, oc) broadcast, f32 epilogue
        if leaky:
            acc = jnp.where(acc > 0, acc, _LEAKY_SLOPE * acc)
        return acc

    x = x_ref[0].astype(jnp.bfloat16)                        # (H, W*Cin)
    h1 = conv(x, s1_ref, t1_ref, b1_ref, leaky=True)         # (H,  W*C) lanes=128
    h2 = conv(h1.astype(jnp.bfloat16), s2_ref, t2_ref, b2_ref, leaky=True)
    h3 = conv(h2.astype(jnp.bfloat16), s3_ref, t3_ref, b3_ref, leaky=False)
    o_ref[0] = h3.astype(o_ref.dtype)


# ----------------------------- wrapper -----------------------------

def _const_spec(shape):
    if len(shape) == 2:
        return pl.BlockSpec(shape, lambda i: (0, 0))
    return pl.BlockSpec(shape, lambda i: (0, 0, 0))


def prior_encoder_forward(x_nchw, prep, *, out_channel):
    N, Cin, H, W = x_nchw.shape
    # NCHW -> (N, H, W*Cin): rows on sublanes, W*C packed on lanes.
    x3d = jnp.transpose(x_nchw, (0, 2, 3, 1)).reshape(N, H, W * Cin)
    x3d = x3d.astype(jnp.float32)

    (s1, t1, b1), (s2, t2, b2), (s3, t3, b3) = prep
    oh3 = s3.shape[1]
    oc3 = t3.shape[2]                 # OW3 * Cout
    ow3 = oc3 // out_channel

    in_specs = [pl.BlockSpec((1, H, W * Cin), lambda i: (i, 0, 0))]
    args = [x3d]
    for s, t, b in ((s1, t1, b1), (s2, t2, b2), (s3, t3, b3)):
        in_specs += [_const_spec(s.shape), _const_spec(t.shape),
                     _const_spec(b.shape)]
        args += [s, t, b]

    out3d = pl.pallas_call(
        _prior_encoder_kernel,
        out_shape=jax.ShapeDtypeStruct((N, oh3, oc3), jnp.float32),
        grid=(N,),
        in_specs=in_specs,
        out_specs=pl.BlockSpec((1, oh3, oc3), lambda i: (i, 0, 0)),
        compiler_params=pltpu.CompilerParams(
            dimension_semantics=("parallel",)),
    )(*args)

    out = out3d.reshape(N, oh3, ow3, out_channel)
    return jnp.transpose(out, (0, 3, 1, 2))                  # -> NCHW


# ----------------------------- host-side weight repack -----------------------------

def prepare_params(params, in_channel, H, W):
    """Repack PyTorch-layout conv weights for the fused kernel (one-time).

    Per layer returns (S, T, b):
      S: (KH, OH, H_in)            0/1 row-selection (stride + H padding), bf16
      T: (KH, W_in*Cin, OW*Cout)   block-Toeplitz weights (W taps/stride/pad), bf16
      b: (1, OW*Cout)              bias tiled over output columns, f32
    """
    specs = [(3, 1, 1), (5, 2, 2), (5, 2, 2)]
    prep = []
    cin, h, w = in_channel, H, W
    for li, (k, s, p) in enumerate(specs):
        wt = np.asarray(params[f"w{li + 1}"], np.float32)     # (Cout,Cin,KH,KW)
        bias = np.asarray(params[f"b{li + 1}"], np.float32)
        cout = wt.shape[0]
        oh, ow = _conv_out(h, k, s, p), _conv_out(w, k, s, p)

        sel = np.zeros((k, oh, h), np.float32)
        for di in range(k):
            for o in range(oh):
                r = s * o + di - p
                if 0 <= r < h:
                    sel[di, o, r] = 1.0

        toep = np.zeros((k, w * cin, ow * cout), np.float32)
        for dj in range(k):
            blk = np.transpose(wt[:, :, :, dj], (2, 1, 0))    # (KH, Cin, Cout)
            for o in range(ow):
                iw = s * o + dj - p
                if 0 <= iw < w:
                    toep[:, iw * cin:(iw + 1) * cin,
                         o * cout:(o + 1) * cout] = blk

        btile = np.tile(bias, ow).reshape(1, ow * cout)

        prep.append((jnp.asarray(sel, jnp.bfloat16),
                     jnp.asarray(toep, jnp.bfloat16),
                     jnp.asarray(btile, jnp.float32)))
        cin, h, w = cout, oh, ow
    return prep


# ----------------------------- params & reference -----------------------------

def init_params(key, in_channel, out_channel):
    def conv_init(k, co, ci, ksz):
        k1, k2 = jax.random.split(k)
        bound = 1.0 / np.sqrt(ci * ksz * ksz)
        w = jax.random.uniform(k1, (co, ci, ksz, ksz), jnp.float32, -bound, bound)
        b = jax.random.uniform(k2, (co,), jnp.float32, -bound, bound)
        return w, b

    k1, k2, k3 = jax.random.split(key, 3)
    w1, b1 = conv_init(k1, out_channel, in_channel, 3)
    w2, b2 = conv_init(k2, out_channel, out_channel, 5)
    w3, b3 = conv_init(k3, out_channel, out_channel, 5)
    return {"w1": w1, "b1": b1, "w2": w2, "b2": b2, "w3": w3, "b3": b3}


def _reference_forward(x, params):
    def conv(h, w, b, stride, pad):
        out = jax.lax.conv_general_dilated(
            h, w, window_strides=(stride, stride),
            padding=((pad, pad), (pad, pad)),
            dimension_numbers=("NCHW", "OIHW", "NCHW"))
        return out + b.reshape(1, -1, 1, 1)

    h = conv(x, params["w1"], params["b1"], 1, 1)
    h = jnp.where(h > 0, h, _LEAKY_SLOPE * h)
    h = conv(h, params["w2"], params["b2"], 2, 2)
    h = jnp.where(h > 0, h, _LEAKY_SLOPE * h)
    return conv(h, params["w3"], params["b3"], 2, 2)


# ----------------------------- main -----------------------------

if __name__ == "__main__":
    key = jax.random.PRNGKey(0)
    kx, kp = jax.random.split(key)
    in_channel, out_channel = 4, 8
    N, H, W = 2, 16, 16

    x = jax.random.normal(kx, (N, in_channel, H, W), jnp.float32)
    params = init_params(kp, in_channel, out_channel)
    prep = prepare_params(params, in_channel, H, W)   # one-time host repack

    fwd = jax.jit(functools.partial(prior_encoder_forward,
                                    out_channel=out_channel))
    y = jax.block_until_ready(fwd(x, prep))

    oh = _conv_out(_conv_out(_conv_out(H, 3, 1, 1), 5, 2, 2), 5, 2, 2)
    ow = _conv_out(_conv_out(_conv_out(W, 3, 1, 1), 5, 2, 2), 5, 2, 2)
    assert y.shape == (N, out_channel, oh, ow), y.shape
    assert bool(jnp.all(jnp.isfinite(y)))

    # Numerical check vs. a pure-XLA reference (bf16 matmul operands => loose tol).
    y_ref = jax.block_until_ready(_reference_forward(x, params))
    assert bool(jnp.allclose(y, y_ref, atol=5e-2, rtol=5e-2)), (
        float(jnp.max(jnp.abs(y - y_ref))))

    print("KERNEL_OK")
</pallas_src>

<mosaic_0001>
module attributes {stable_mosaic.version = 11 : i64} {
  func.func @_prior_encoder_kernel(%arg0: i32, %arg1: memref<1x16x64xf32, #tpu.memory_space<vmem>>, %arg2: memref<3x16x16xbf16, #tpu.memory_space<vmem>>, %arg3: memref<3x64x128xbf16, #tpu.memory_space<vmem>>, %arg4: memref<1x128xf32, #tpu.memory_space<vmem>>, %arg5: memref<5x8x16xbf16, #tpu.memory_space<vmem>>, %arg6: memref<5x128x64xbf16, #tpu.memory_space<vmem>>, %arg7: memref<1x64xf32, #tpu.memory_space<vmem>>, %arg8: memref<5x4x8xbf16, #tpu.memory_space<vmem>>, %arg9: memref<5x64x32xbf16, #tpu.memory_space<vmem>>, %arg10: memref<1x32xf32, #tpu.memory_space<vmem>>, %arg11: memref<1x4x32xf32, #tpu.memory_space<vmem>>) attributes {dimension_semantics = [#tpu.dimension_semantics<parallel>], iteration_bounds = array<i64: 2>, scalar_prefetch = 0 : i64, scratch_operands = 0 : i64, tpu.core_type = #tpu.core_type<tc>, window_params = [{transform_indices = @transform_0, window_bounds = array<i64: 1, 16, 64>}, {pipeline_mode = #tpu.pipeline_mode<synchronous>, transform_indices = @transform_1, window_bounds = array<i64: 3, 16, 16>}, {pipeline_mode = #tpu.pipeline_mode<synchronous>, transform_indices = @transform_2, window_bounds = array<i64: 3, 64, 128>}, {pipeline_mode = #tpu.pipeline_mode<synchronous>, transform_indices = @transform_3, window_bounds = array<i64: 1, 128>}, {pipeline_mode = #tpu.pipeline_mode<synchronous>, transform_indices = @transform_4, window_bounds = array<i64: 5, 8, 16>}, {pipeline_mode = #tpu.pipeline_mode<synchronous>, transform_indices = @transform_5, window_bounds = array<i64: 5, 128, 64>}, {pipeline_mode = #tpu.pipeline_mode<synchronous>, transform_indices = @transform_6, window_bounds = array<i64: 1, 64>}, {pipeline_mode = #tpu.pipeline_mode<synchronous>, transform_indices = @transform_7, window_bounds = array<i64: 5, 4, 8>}, {pipeline_mode = #tpu.pipeline_mode<synchronous>, transform_indices = @transform_8, window_bounds = array<i64: 5, 64, 32>}, {pipeline_mode = #tpu.pipeline_mode<synchronous>, transform_indices = @transform_9, window_bounds = array<i64: 1, 32>}, {transform_indices = @transform_10, window_bounds = array<i64: 1, 4, 32>}]} {
    %c0 = arith.constant 0 : index
    %c0_0 = arith.constant 0 : index
    %c0_1 = arith.constant 0 : index
    %0 = vector.load %arg1[%c0, %c0_0, %c0_1] : memref<1x16x64xf32, #tpu.memory_space<vmem>>, vector<1x16x64xf32>
    %1 = vector.shape_cast %0 : vector<1x16x64xf32> to vector<16x64xf32>
    %2 = arith.truncf %1 : vector<16x64xf32> to vector<16x64xbf16>
    %cst = arith.constant 0.000000e+00 : f32
    %3 = vector.broadcast %cst : f32 to vector<16x128xf32>
    %c0_2 = arith.constant 0 : index
    %c0_3 = arith.constant 0 : index
    %c0_4 = arith.constant 0 : index
    %4 = vector.load %arg2[%c0_2, %c0_3, %c0_4] : memref<3x16x16xbf16, #tpu.memory_space<vmem>>, vector<1x16x16xbf16>
    %5 = vector.shape_cast %4 : vector<1x16x16xbf16> to vector<16x16xbf16>
    %cst_5 = arith.constant dense<0.000000e+00> : vector<16x64xf32>
    %6 = tpu.matmul %5, %2, %cst_5 {dimension_numbers = #tpu.dot_dimension_numbers<[1], [0], [0], [1], [0, 0, 1, 1], [], []>} : vector<16x16xbf16>, vector<16x64xbf16>, vector<16x64xf32> -> vector<16x64xf32>
    %7 = arith.truncf %6 : vector<16x64xf32> to vector<16x64xbf16>
    %c0_6 = arith.constant 0 : index
    %c0_7 = arith.constant 0 : index
    %c0_8 = arith.constant 0 : index
    %8 = vector.load %arg3[%c0_6, %c0_7, %c0_8] : memref<3x64x128xbf16, #tpu.memory_space<vmem>>, vector<1x64x128xbf16>
    %9 = vector.shape_cast %8 : vector<1x64x128xbf16> to vector<64x128xbf16>
    %cst_9 = arith.constant dense<0.000000e+00> : vector<16x128xf32>
    %10 = tpu.matmul %7, %9, %cst_9 {dimension_numbers = #tpu.dot_dimension_numbers<[1], [0], [0], [1], [0, 0, 1, 1], [], []>} : vector<16x64xbf16>, vector<64x128xbf16>, vector<16x128xf32> -> vector<16x128xf32>
    %11 = arith.addf %3, %10 : vector<16x128xf32>
    %c1 = arith.constant 1 : index
    %c0_10 = arith.constant 0 : index
    %c0_11 = arith.constant 0 : index
    %12 = vector.load %arg2[%c1, %c0_10, %c0_11] : memref<3x16x16xbf16, #tpu.memory_space<vmem>>, vector<1x16x16xbf16>
    %13 = vector.shape_cast %12 : vector<1x16x16xbf16> to vector<16x16xbf16>
    %cst_12 = arith.constant dense<0.000000e+00> : vector<16x64xf32>
    %14 = tpu.matmul %13, %2, %cst_12 {dimension_numbers = #tpu.dot_dimension_numbers<[1], [0], [0], [1], [0, 0, 1, 1], [], []>} : vector<16x16xbf16>, vector<16x64xbf16>, vector<16x64xf32> -> vector<16x64xf32>
    %15 = arith.truncf %14 : vector<16x64xf32> to vector<16x64xbf16>
    %c1_13 = arith.constant 1 : index
    %c0_14 = arith.constant 0 : index
    %c0_15 = arith.constant 0 : index
    %16 = vector.load %arg3[%c1_13, %c0_14, %c0_15] : memref<3x64x128xbf16, #tpu.memory_space<vmem>>, vector<1x64x128xbf16>
    %17 = vector.shape_cast %16 : vector<1x64x128xbf16> to vector<64x128xbf16>
    %cst_16 = arith.constant dense<0.000000e+00> : vector<16x128xf32>
    %18 = tpu.matmul %15, %17, %cst_16 {dimension_numbers = #tpu.dot_dimension_numbers<[1], [0], [0], [1], [0, 0, 1, 1], [], []>} : vector<16x64xbf16>, vector<64x128xbf16>, vector<16x128xf32> -> vector<16x128xf32>
    %19 = arith.addf %11, %18 : vector<16x128xf32>
    %c2 = arith.constant 2 : index
    %c0_17 = arith.constant 0 : index
    %c0_18 = arith.constant 0 : index
    %20 = vector.load %arg2[%c2, %c0_17, %c0_18] : memref<3x16x16xbf16, #tpu.memory_space<vmem>>, vector<1x16x16xbf16>
    %21 = vector.shape_cast %20 : vector<1x16x16xbf16> to vector<16x16xbf16>
    %cst_19 = arith.constant dense<0.000000e+00> : vector<16x64xf32>
    %22 = tpu.matmul %21, %2, %cst_19 {dimension_numbers = #tpu.dot_dimension_numbers<[1], [0], [0], [1], [0, 0, 1, 1], [], []>} : vector<16x16xbf16>, vector<16x64xbf16>, vector<16x64xf32> -> vector<16x64xf32>
    %23 = arith.truncf %22 : vector<16x64xf32> to vector<16x64xbf16>
    %c2_20 = arith.constant 2 : index
    %c0_21 = arith.constant 0 : index
    %c0_22 = arith.constant 0 : index
    %24 = vector.load %arg3[%c2_20, %c0_21, %c0_22] : memref<3x64x128xbf16, #tpu.memory_space<vmem>>, vector<1x64x128xbf16>
    %25 = vector.shape_cast %24 : vector<1x64x128xbf16> to vector<64x128xbf16>
    %cst_23 = arith.constant dense<0.000000e+00> : vector<16x128xf32>
    %26 = tpu.matmul %23, %25, %cst_23 {dimension_numbers = #tpu.dot_dimension_numbers<[1], [0], [0], [1], [0, 0, 1, 1], [], []>} : vector<16x64xbf16>, vector<64x128xbf16>, vector<16x128xf32> -> vector<16x128xf32>
    %27 = arith.addf %19, %26 : vector<16x128xf32>
    %c0_24 = arith.constant 0 : index
    %c0_25 = arith.constant 0 : index
    %28 = vector.load %arg4[%c0_24, %c0_25] : memref<1x128xf32, #tpu.memory_space<vmem>>, vector<1x128xf32>
    %29 = vector.broadcast %28 : vector<1x128xf32> to vector<16x128xf32>
    %30 = arith.addf %27, %29 : vector<16x128xf32>
    %cst_26 = arith.constant 0.000000e+00 : f32
    %31 = vector.broadcast %cst_26 : f32 to vector<16x128xf32>
    %32 = arith.cmpf ogt, %30, %31 : vector<16x128xf32>
    %cst_27 = arith.constant 0.00999999977 : f32
    %33 = vector.broadcast %cst_27 : f32 to vector<16x128xf32>
    %34 = arith.mulf %33, %30 : vector<16x128xf32>
    %35 = arith.select %32, %30, %34 : vector<16x128xi1>, vector<16x128xf32>
    %36 = arith.truncf %35 : vector<16x128xf32> to vector<16x128xbf16>
    %cst_28 = arith.constant 0.000000e+00 : f32
    %37 = vector.broadcast %cst_28 : f32 to vector<8x64xf32>
    %c0_29 = arith.constant 0 : index
    %c0_30 = arith.constant 0 : index
    %c0_31 = arith.constant 0 : index
    %38 = vector.load %arg5[%c0_29, %c0_30, %c0_31] : memref<5x8x16xbf16, #tpu.memory_space<vmem>>, vector<1x8x16xbf16>
    %39 = vector.shape_cast %38 : vector<1x8x16xbf16> to vector<8x16xbf16>
    %cst_32 = arith.constant dense<0.000000e+00> : vector<8x128xf32>
    %40 = tpu.matmul %39, %36, %cst_32 {dimension_numbers = #tpu.dot_dimension_numbers<[1], [0], [0], [1], [0, 0, 1, 1], [], []>} : vector<8x16xbf16>, vector<16x128xbf16>, vector<8x128xf32> -> vector<8x128xf32>
    %41 = arith.truncf %40 : vector<8x128xf32> to vector<8x128xbf16>
    %c0_33 = arith.constant 0 : index
    %c0_34 = arith.constant 0 : index
    %c0_35 = arith.constant 0 : index
    %42 = vector.load %arg6[%c0_33, %c0_34, %c0_35] : memref<5x128x64xbf16, #tpu.memory_space<vmem>>, vector<1x128x64xbf16>
    %43 = vector.shape_cast %42 : vector<1x128x64xbf16> to vector<128x64xbf16>
    %cst_36 = arith.constant dense<0.000000e+00> : vector<8x64xf32>
    %44 = tpu.matmul %41, %43, %cst_36 {dimension_numbers = #tpu.dot_dimension_numbers<[1], [0], [0], [1], [0, 0, 1, 1], [], []>} : vector<8x128xbf16>, vector<128x64xbf16>, vector<8x64xf32> -> vector<8x64xf32>
    %45 = arith.addf %37, %44 : vector<8x64xf32>
    %c1_37 = arith.constant 1 : index
    %c0_38 = arith.constant 0 : index
    %c0_39 = arith.constant 0 : index
    %46 = vector.load %arg5[%c1_37, %c0_38, %c0_39] : memref<5x8x16xbf16, #tpu.memory_space<vmem>>, vector<1x8x16xbf16>
    %47 = vector.shape_cast %46 : vector<1x8x16xbf16> to vector<8x16xbf16>
    %cst_40 = arith.constant dense<0.000000e+00> : vector<8x128xf32>
    %48 = tpu.matmul %47, %36, %cst_40 {dimension_numbers = #tpu.dot_dimension_numbers<[1], [0], [0], [1], [0, 0, 1, 1], [], []>} : vector<8x16xbf16>, vector<16x128xbf16>, vector<8x128xf32> -> vector<8x128xf32>
    %49 = arith.truncf %48 : vector<8x128xf32> to vector<8x128xbf16>
    %c1_41 = arith.constant 1 : index
    %c0_42 = arith.constant 0 : index
    %c0_43 = arith.constant 0 : index
    %50 = vector.load %arg6[%c1_41, %c0_42, %c0_43] : memref<5x128x64xbf16, #tpu.memory_space<vmem>>, vector<1x128x64xbf16>
    %51 = vector.shape_cast %50 : vector<1x128x64xbf16> to vector<128x64xbf16>
    %cst_44 = arith.constant dense<0.000000e+00> : vector<8x64xf32>
    %52 = tpu.matmul %49, %51, %cst_44 {dimension_numbers = #tpu.dot_dimension_numbers<[1], [0], [0], [1], [0, 0, 1, 1], [], []>} : vector<8x128xbf16>, vector<128x64xbf16>, vector<8x64xf32> -> vector<8x64xf32>
    %53 = arith.addf %45, %52 : vector<8x64xf32>
    %c2_45 = arith.constant 2 : index
    %c0_46 = arith.constant 0 : index
    %c0_47 = arith.constant 0 : index
    %54 = vector.load %arg5[%c2_45, %c0_46, %c0_47] : memref<5x8x16xbf16, #tpu.memory_space<vmem>>, vector<1x8x16xbf16>
    %55 = vector.shape_cast %54 : vector<1x8x16xbf16> to vector<8x16xbf16>
    %cst_48 = arith.constant dense<0.000000e+00> : vector<8x128xf32>
    %56 = tpu.matmul %55, %36, %cst_48 {dimension_numbers = #tpu.dot_dimension_numbers<[1], [0], [0], [1], [0, 0, 1, 1], [], []>} : vector<8x16xbf16>, vector<16x128xbf16>, vector<8x128xf32> -> vector<8x128xf32>
    %57 = arith.truncf %56 : vector<8x128xf32> to vector<8x128xbf16>
    %c2_49 = arith.constant 2 : index
    %c0_50 = arith.constant 0 : index
    %c0_51 = arith.constant 0 : index
    %58 = vector.load %arg6[%c2_49, %c0_50, %c0_51] : memref<5x128x64xbf16, #tpu.memory_space<vmem>>, vector<1x128x64xbf16>
    %59 = vector.shape_cast %58 : vector<1x128x64xbf16> to vector<128x64xbf16>
    %cst_52 = arith.constant dense<0.000000e+00> : vector<8x64xf32>
    %60 = tpu.matmul %57, %59, %cst_52 {dimension_numbers = #tpu.dot_dimension_numbers<[1], [0], [0], [1], [0, 0, 1, 1], [], []>} : vector<8x128xbf16>, vector<128x64xbf16>, vector<8x64xf32> -> vector<8x64xf32>
    %61 = arith.addf %53, %60 : vector<8x64xf32>
    %c3 = arith.constant 3 : index
    %c0_53 = arith.constant 0 : index
    %c0_54 = arith.constant 0 : index
    %62 = vector.load %arg5[%c3, %c0_53, %c0_54] : memref<5x8x16xbf16, #tpu.memory_space<vmem>>, vector<1x8x16xbf16>
    %63 = vector.shape_cast %62 : vector<1x8x16xbf16> to vector<8x16xbf16>
    %cst_55 = arith.constant dense<0.000000e+00> : vector<8x128xf32>
    %64 = tpu.matmul %63, %36, %cst_55 {dimension_numbers = #tpu.dot_dimension_numbers<[1], [0], [0], [1], [0, 0, 1, 1], [], []>} : vector<8x16xbf16>, vector<16x128xbf16>, vector<8x128xf32> -> vector<8x128xf32>
    %65 = arith.truncf %64 : vector<8x128xf32> to vector<8x128xbf16>
    %c3_56 = arith.constant 3 : index
    %c0_57 = arith.constant 0 : index
    %c0_58 = arith.constant 0 : index
    %66 = vector.load %arg6[%c3_56, %c0_57, %c0_58] : memref<5x128x64xbf16, #tpu.memory_space<vmem>>, vector<1x128x64xbf16>
    %67 = vector.shape_cast %66 : vector<1x128x64xbf16> to vector<128x64xbf16>
    %cst_59 = arith.constant dense<0.000000e+00> : vector<8x64xf32>
    %68 = tpu.matmul %65, %67, %cst_59 {dimension_numbers = #tpu.dot_dimension_numbers<[1], [0], [0], [1], [0, 0, 1, 1], [], []>} : vector<8x128xbf16>, vector<128x64xbf16>, vector<8x64xf32> -> vector<8x64xf32>
    %69 = arith.addf %61, %68 : vector<8x64xf32>
    %c4 = arith.constant 4 : index
    %c0_60 = arith.constant 0 : index
    %c0_61 = arith.constant 0 : index
    %70 = vector.load %arg5[%c4, %c0_60, %c0_61] : memref<5x8x16xbf16, #tpu.memory_space<vmem>>, vector<1x8x16xbf16>
    %71 = vector.shape_cast %70 : vector<1x8x16xbf16> to vector<8x16xbf16>
    %cst_62 = arith.constant dense<0.000000e+00> : vector<8x128xf32>
    %72 = tpu.matmul %71, %36, %cst_62 {dimension_numbers = #tpu.dot_dimension_numbers<[1], [0], [0], [1], [0, 0, 1, 1], [], []>} : vector<8x16xbf16>, vector<16x128xbf16>, vector<8x128xf32> -> vector<8x128xf32>
    %73 = arith.truncf %72 : vector<8x128xf32> to vector<8x128xbf16>
    %c4_63 = arith.constant 4 : index
    %c0_64 = arith.constant 0 : index
    %c0_65 = arith.constant 0 : index
    %74 = vector.load %arg6[%c4_63, %c0_64, %c0_65] : memref<5x128x64xbf16, #tpu.memory_space<vmem>>, vector<1x128x64xbf16>
    %75 = vector.shape_cast %74 : vector<1x128x64xbf16> to vector<128x64xbf16>
    %cst_66 = arith.constant dense<0.000000e+00> : vector<8x64xf32>
    %76 = tpu.matmul %73, %75, %cst_66 {dimension_numbers = #tpu.dot_dimension_numbers<[1], [0], [0], [1], [0, 0, 1, 1], [], []>} : vector<8x128xbf16>, vector<128x64xbf16>, vector<8x64xf32> -> vector<8x64xf32>
    %77 = arith.addf %69, %76 : vector<8x64xf32>
    %c0_67 = arith.constant 0 : index
    %c0_68 = arith.constant 0 : index
    %78 = vector.load %arg7[%c0_67, %c0_68] : memref<1x64xf32, #tpu.memory_space<vmem>>, vector<1x64xf32>
    %79 = vector.broadcast %78 : vector<1x64xf32> to vector<8x64xf32>
    %80 = arith.addf %77, %79 : vector<8x64xf32>
    %cst_69 = arith.constant 0.000000e+00 : f32
    %81 = vector.broadcast %cst_69 : f32 to vector<8x64xf32>
    %82 = arith.cmpf ogt, %80, %81 : vector<8x64xf32>
    %cst_70 = arith.constant 0.00999999977 : f32
    %83 = vector.broadcast %cst_70 : f32 to vector<8x64xf32>
    %84 = arith.mulf %83, %80 : vector<8x64xf32>
    %85 = arith.select %82, %80, %84 : vector<8x64xi1>, vector<8x64xf32>
    %86 = arith.truncf %85 : vector<8x64xf32> to vector<8x64xbf16>
    %cst_71 = arith.constant 0.000000e+00 : f32
    %87 = vector.broadcast %cst_71 : f32 to vector<4x32xf32>
    %c0_72 = arith.constant 0 : index
    %c0_73 = arith.constant 0 : index
    %c0_74 = arith.constant 0 : index
    %88 = vector.load %arg8[%c0_72, %c0_73, %c0_74] : memref<5x4x8xbf16, #tpu.memory_space<vmem>>, vector<1x4x8xbf16>
    %89 = vector.shape_cast %88 : vector<1x4x8xbf16> to vector<4x8xbf16>
    %cst_75 = arith.constant dense<0.000000e+00> : vector<4x64xf32>
    %90 = tpu.matmul %89, %86, %cst_75 {dimension_numbers = #tpu.dot_dimension_numbers<[1], [0], [0], [1], [0, 0, 1, 1], [], []>} : vector<4x8xbf16>, vector<8x64xbf16>, vector<4x64xf32> -> vector<4x64xf32>
    %91 = arith.truncf %90 : vector<4x64xf32> to vector<4x64xbf16>
    %c0_76 = arith.constant 0 : index
    %c0_77 = arith.constant 0 : index
    %c0_78 = arith.constant 0 : index
    %92 = vector.load %arg9[%c0_76, %c0_77, %c0_78] : memref<5x64x32xbf16, #tpu.memory_space<vmem>>, vector<1x64x32xbf16>
    %93 = vector.shape_cast %92 : vector<1x64x32xbf16> to vector<64x32xbf16>
    %cst_79 = arith.constant dense<0.000000e+00> : vector<4x32xf32>
    %94 = tpu.matmul %91, %93, %cst_79 {dimension_numbers = #tpu.dot_dimension_numbers<[1], [0], [0], [1], [0, 0, 1, 1], [], []>} : vector<4x64xbf16>, vector<64x32xbf16>, vector<4x32xf32> -> vector<4x32xf32>
    %95 = arith.addf %87, %94 : vector<4x32xf32>
    %c1_80 = arith.constant 1 : index
    %c0_81 = arith.constant 0 : index
    %c0_82 = arith.constant 0 : index
    %96 = vector.load %arg8[%c1_80, %c0_81, %c0_82] : memref<5x4x8xbf16, #tpu.memory_space<vmem>>, vector<1x4x8xbf16>
    %97 = vector.shape_cast %96 : vector<1x4x8xbf16> to vector<4x8xbf16>
    %cst_83 = arith.constant dense<0.000000e+00> : vector<4x64xf32>
    %98 = tpu.matmul %97, %86, %cst_83 {dimension_numbers = #tpu.dot_dimension_numbers<[1], [0], [0], [1], [0, 0, 1, 1], [], []>} : vector<4x8xbf16>, vector<8x64xbf16>, vector<4x64xf32> -> vector<4x64xf32>
    %99 = arith.truncf %98 : vector<4x64xf32> to vector<4x64xbf16>
    %c1_84 = arith.constant 1 : index
    %c0_85 = arith.constant 0 : index
    %c0_86 = arith.constant 0 : index
    %100 = vector.load %arg9[%c1_84, %c0_85, %c0_86] : memref<5x64x32xbf16, #tpu.memory_space<vmem>>, vector<1x64x32xbf16>
    %101 = vector.shape_cast %100 : vector<1x64x32xbf16> to vector<64x32xbf16>
    %cst_87 = arith.constant dense<0.000000e+00> : vector<4x32xf32>
    %102 = tpu.matmul %99, %101, %cst_87 {dimension_numbers = #tpu.dot_dimension_numbers<[1], [0], [0], [1], [0, 0, 1, 1], [], []>} : vector<4x64xbf16>, vector<64x32xbf16>, vector<4x32xf32> -> vector<4x32xf32>
    %103 = arith.addf %95, %102 : vector<4x32xf32>
    %c2_88 = arith.constant 2 : index
    %c0_89 = arith.constant 0 : index
    %c0_90 = arith.constant 0 : index
    %104 = vector.load %arg8[%c2_88, %c0_89, %c0_90] : memref<5x4x8xbf16, #tpu.memory_space<vmem>>, vector<1x4x8xbf16>
    %105 = vector.shape_cast %104 : vector<1x4x8xbf16> to vector<4x8xbf16>
    %cst_91 = arith.constant dense<0.000000e+00> : vector<4x64xf32>
    %106 = tpu.matmul %105, %86, %cst_91 {dimension_numbers = #tpu.dot_dimension_numbers<[1], [0], [0], [1], [0, 0, 1, 1], [], []>} : vector<4x8xbf16>, vector<8x64xbf16>, vector<4x64xf32> -> vector<4x64xf32>
    %107 = arith.truncf %106 : vector<4x64xf32> to vector<4x64xbf16>
    %c2_92 = arith.constant 2 : index
    %c0_93 = arith.constant 0 : index
    %c0_94 = arith.constant 0 : index
    %108 = vector.load %arg9[%c2_92, %c0_93, %c0_94] : memref<5x64x32xbf16, #tpu.memory_space<vmem>>, vector<1x64x32xbf16>
    %109 = vector.shape_cast %108 : vector<1x64x32xbf16> to vector<64x32xbf16>
    %cst_95 = arith.constant dense<0.000000e+00> : vector<4x32xf32>
    %110 = tpu.matmul %107, %109, %cst_95 {dimension_numbers = #tpu.dot_dimension_numbers<[1], [0], [0], [1], [0, 0, 1, 1], [], []>} : vector<4x64xbf16>, vector<64x32xbf16>, vector<4x32xf32> -> vector<4x32xf32>
    %111 = arith.addf %103, %110 : vector<4x32xf32>
    %c3_96 = arith.constant 3 : index
    %c0_97 = arith.constant 0 : index
    %c0_98 = arith.constant 0 : index
    %112 = vector.load %arg8[%c3_96, %c0_97, %c0_98] : memref<5x4x8xbf16, #tpu.memory_space<vmem>>, vector<1x4x8xbf16>
    %113 = vector.shape_cast %112 : vector<1x4x8xbf16> to vector<4x8xbf16>
    %cst_99 = arith.constant dense<0.000000e+00> : vector<4x64xf32>
    %114 = tpu.matmul %113, %86, %cst_99 {dimension_numbers = #tpu.dot_dimension_numbers<[1], [0], [0], [1], [0, 0, 1, 1], [], []>} : vector<4x8xbf16>, vector<8x64xbf16>, vector<4x64xf32> -> vector<4x64xf32>
    %115 = arith.truncf %114 : vector<4x64xf32> to vector<4x64xbf16>
    %c3_100 = arith.constant 3 : index
    %c0_101 = arith.constant 0 : index
    %c0_102 = arith.constant 0 : index
    %116 = vector.load %arg9[%c3_100, %c0_101, %c0_102] : memref<5x64x32xbf16, #tpu.memory_space<vmem>>, vector<1x64x32xbf16>
    %117 = vector.shape_cast %116 : vector<1x64x32xbf16> to vector<64x32xbf16>
    %cst_103 = arith.constant dense<0.000000e+00> : vector<4x32xf32>
    %118 = tpu.matmul %115, %117, %cst_103 {dimension_numbers = #tpu.dot_dimension_numbers<[1], [0], [0], [1], [0, 0, 1, 1], [], []>} : vector<4x64xbf16>, vector<64x32xbf16>, vector<4x32xf32> -> vector<4x32xf32>
    %119 = arith.addf %111, %118 : vector<4x32xf32>
    %c4_104 = arith.constant 4 : index
    %c0_105 = arith.constant 0 : index
    %c0_106 = arith.constant 0 : index
    %120 = vector.load %arg8[%c4_104, %c0_105, %c0_106] : memref<5x4x8xbf16, #tpu.memory_space<vmem>>, vector<1x4x8xbf16>
    %121 = vector.shape_cast %120 : vector<1x4x8xbf16> to vector<4x8xbf16>
    %cst_107 = arith.constant dense<0.000000e+00> : vector<4x64xf32>
    %122 = tpu.matmul %121, %86, %cst_107 {dimension_numbers = #tpu.dot_dimension_numbers<[1], [0], [0], [1], [0, 0, 1, 1], [], []>} : vector<4x8xbf16>, vector<8x64xbf16>, vector<4x64xf32> -> vector<4x64xf32>
    %123 = arith.truncf %122 : vector<4x64xf32> to vector<4x64xbf16>
    %c4_108 = arith.constant 4 : index
    %c0_109 = arith.constant 0 : index
    %c0_110 = arith.constant 0 : index
    %124 = vector.load %arg9[%c4_108, %c0_109, %c0_110] : memref<5x64x32xbf16, #tpu.memory_space<vmem>>, vector<1x64x32xbf16>
    %125 = vector.shape_cast %124 : vector<1x64x32xbf16> to vector<64x32xbf16>
    %cst_111 = arith.constant dense<0.000000e+00> : vector<4x32xf32>
    %126 = tpu.matmul %123, %125, %cst_111 {dimension_numbers = #tpu.dot_dimension_numbers<[1], [0], [0], [1], [0, 0, 1, 1], [], []>} : vector<4x64xbf16>, vector<64x32xbf16>, vector<4x32xf32> -> vector<4x32xf32>
    %127 = arith.addf %119, %126 : vector<4x32xf32>
    %c0_112 = arith.constant 0 : index
    %c0_113 = arith.constant 0 : index
    %128 = vector.load %arg10[%c0_112, %c0_113] : memref<1x32xf32, #tpu.memory_space<vmem>>, vector<1x32xf32>
    %129 = vector.broadcast %128 : vector<1x32xf32> to vector<4x32xf32>
    %130 = arith.addf %127, %129 : vector<4x32xf32>
    %c0_114 = arith.constant 0 : index
    %c0_115 = arith.constant 0 : index
    %c0_116 = arith.constant 0 : index
    %131 = vector.load %arg11[%c0_114, %c0_115, %c0_116] : memref<1x4x32xf32, #tpu.memory_space<vmem>>, vector<1x4x32xf32>
    %132 = vector.shape_cast %131 : vector<1x4x32xf32> to vector<4x32xf32>
    %133 = vector.shape_cast %130 : vector<4x32xf32> to vector<1x4x32xf32>
    tpu.vector_store %arg11[%c0_114, %c0_115, %c0_116], %133 {strides = array<i32>} : memref<1x4x32xf32, #tpu.memory_space<vmem>>, vector<1x4x32xf32>,
    return
  }
  func.func @transform_0(%arg0: i32) -> (i32, i32, i32) {
    %c0_i32 = arith.constant 0 : i32
    %c0_i32_0 = arith.constant 0 : i32
    %c0_i32_1 = arith.constant 0 : i32
    return %arg0, %c0_i32, %c0_i32_0 : i32, i32, i32
  }
  func.func @transform_1(%arg0: i32) -> (i32, i32, i32) {
    %c0_i32 = arith.constant 0 : i32
    %c0_i32_0 = arith.constant 0 : i32
    %c0_i32_1 = arith.constant 0 : i32
    %c0_i32_2 = arith.constant 0 : i32
    return %c0_i32, %c0_i32_0, %c0_i32_1 : i32, i32, i32
  }
  func.func @transform_2(%arg0: i32) -> (i32, i32, i32) {
    %c0_i32 = arith.constant 0 : i32
    %c0_i32_0 = arith.constant 0 : i32
    %c0_i32_1 = arith.constant 0 : i32
    %c0_i32_2 = arith.constant 0 : i32
    return %c0_i32, %c0_i32_0, %c0_i32_1 : i32, i32, i32
  }
  func.func @transform_3(%arg0: i32) -> (i32, i32) {
    %c0_i32 = arith.constant 0 : i32
    %c0_i32_0 = arith.constant 0 : i32
    %c0_i32_1 = arith.constant 0 : i32
    return %c0_i32, %c0_i32_0 : i32, i32
  }
  func.func @transform_4(%arg0: i32) -> (i32, i32, i32) {
    %c0_i32 = arith.constant 0 : i32
    %c0_i32_0 = arith.constant 0 : i32
    %c0_i32_1 = arith.constant 0 : i32
    %c0_i32_2 = arith.constant 0 : i32
    return %c0_i32, %c0_i32_0, %c0_i32_1 : i32, i32, i32
  }
  func.func @transform_5(%arg0: i32) -> (i32, i32, i32) {
    %c0_i32 = arith.constant 0 : i32
    %c0_i32_0 = arith.constant 0 : i32
    %c0_i32_1 = arith.constant 0 : i32
    %c0_i32_2 = arith.constant 0 : i32
    return %c0_i32, %c0_i32_0, %c0_i32_1 : i32, i32, i32
  }
  func.func @transform_6(%arg0: i32) -> (i32, i32) {
    %c0_i32 = arith.constant 0 : i32
    %c0_i32_0 = arith.constant 0 : i32
    %c0_i32_1 = arith.constant 0 : i32
    return %c0_i32, %c0_i32_0 : i32, i32
  }
  func.func @transform_7(%arg0: i32) -> (i32, i32, i32) {
    %c0_i32 = arith.constant 0 : i32
    %c0_i32_0 = arith.constant 0 : i32
    %c0_i32_1 = arith.constant 0 : i32
    %c0_i32_2 = arith.constant 0 : i32
    return %c0_i32, %c0_i32_0, %c0_i32_1 : i32, i32, i32
  }
  func.func @transform_8(%arg0: i32) -> (i32, i32, i32) {
    %c0_i32 = arith.constant 0 : i32
    %c0_i32_0 = arith.constant 0 : i32
    %c0_i32_1 = arith.constant 0 : i32
    %c0_i32_2 = arith.constant 0 : i32
    return %c0_i32, %c0_i32_0, %c0_i32_1 : i32, i32, i32
  }
  func.func @transform_9(%arg0: i32) -> (i32, i32) {
    %c0_i32 = arith.constant 0 : i32
    %c0_i32_0 = arith.constant 0 : i32
    %c0_i32_1 = arith.constant 0 : i32
    return %c0_i32, %c0_i32_0 : i32, i32
  }
  func.func @transform_10(%arg0: i32) -> (i32, i32, i32) {
    %c0_i32 = arith.constant 0 : i32
    %c0_i32_0 = arith.constant 0 : i32
    %c0_i32_1 = arith.constant 0 : i32
    return %arg0, %c0_i32, %c0_i32_0 : i32, i32, i32
  }
}

</mosaic_0001>

<bundles_post_ra>
// kernel: prior_encoder_forward.1
= control target key start
LH: loop header
LB: loop body
LE: loop exit
PB: predicated region body
PF: predicated region fallthrough
CT: control target
= control target key end

     0   :  { %s2111_s13 = smov 0   ;;  %s2417_s0 = inlined_call_operand.vmem [shape: f32[2,16,64], index: 0, kind: input, shape index: {}]   ;;  %s2418_s1 = inlined_call_operand.vmem [shape: bf16[3,16,16], index: 1, kind: input, shape index: {}]   ;;  %s2419_s2 = inlined_call_operand.vmem [shape: bf16[3,64,128], index: 2, kind: input, shape index: {}]   ;;  %s2420_s3 = inlined_call_operand.vmem [shape: f32[1,128], index: 3, kind: input, shape index: {}]   ;;  %s2421_s4 = inlined_call_operand.vmem [shape: bf16[5,8,16], index: 4, kind: input, shape index: {}]   ;;  %s2422_s5 = inlined_call_operand.vmem [shape: bf16[5,128,64], index: 5, kind: input, shape index: {}]   ;;  %s2423_s6 = inlined_call_operand.vmem [shape: f32[1,64], index: 6, kind: input, shape index: {}]   ;;  %s2424_s7 = inlined_call_operand.vmem [shape: bf16[5,4,8], index: 7, kind: input, shape index: {}]   ;;  %s2425_s8 = inlined_call_operand.vmem [shape: bf16[5,64,32], index: 8, kind: input, shape index: {}]   ;;  %s2426_s9 = inlined_call_operand.vmem [shape: f32[1,32], index: 9, kind: input, shape index: {}]   ;;  %s2427_s10 = inlined_call_operand.vmem [shape: f32[2,4,32], index: 10, kind: output, shape index: {}]  }
   0x1 LB: > { %s1506_s14 = sadd.s32 4294967295, %s2054_s13   ;;  %p1510_p0 = scmp.ge.s32.totalorder %s2054_s13, 1  ;;  %s2054_s13 = sphi %s2111_s13, %s20_s13  }
   0x2   : > { %p312_p1 = scmp.lt.s32.totalorder %s2054_s13, 3 }
   0x4   : > { %p313_p2 = pnand %p1510_p0, %p312_p1 }
   0x5   : > { %p349_p3 = scmp.lt.s32.totalorder (!%p313_p2), %s1506_s14, 1 }
   0x6   : > { %316 = sbr.rel (%p313_p2) target bundleno = 1153 (0x481), region = 60 }
   0xb   : > { %v1971_v0 = vld [vmem:[%s2419_s2 + $0x38] sm:$0xff]  ;;  %s2429_s14 = smov (!%p349_p3, %s1506_s14), 1  ;;  %v1962_v5 = vld [vmem:[%s2418_s1] sm:$0xff]  ;;  %v1967_v6 = vld [vmem:[%s2418_s1 + $0x8] sm:$0xff]  ;;  %vm369_vm0 = vcmask 130048   ;;  %vm455_vm1 = vcmask 523264  }
   0xc   : > { %v1966_v1 = vld [vmem:[%s2419_s2 + $0x18] sm:$0xff]  ;;  %463 = vmatpush.bf16.msra.mxu2 %v1971_v0  ;;  %s1961_s19 = sshll.u32 %s2429_s14, 4  ;;  %v1972_v7 = vld [vmem:[%s2418_s1 + $0x10] sm:$0xff]  ;;  %v1969_v10 = vld [vmem:[%s2419_s2 + $0x28] sm:$0xff]  ;;  %vm1105_vm5 = vcmask 1043456   ;;  %vm1101_vm6 = vcmask 64512  }
   0xd   : > { %504 = vmatpush.bf16.msra.mxu3 %v1966_v1  ;;  %s353_s22 = scalar_lea.vmem %s2417_s0, %s1961_s19  ;;  %v1970_v8 = vld [vmem:[%s2419_s2 + $0x30] sm:$0xff]  ;;  %v1964_v11 = vld [vmem:[%s2419_s2 + $0x8] sm:$0xff]  ;;  %v1968_v12 = vld [vmem:[%s2419_s2 + $0x20] sm:$0xff]  ;;  %s1513_s11 = sshll.u32 %s2429_s14, 2  ;;  %vm1451_vm7 = vcmask 257024  }
   0xe   : > { %v359_v2 = vld [vmem:[%s353_s22] sm:$0xff]  ;;  %v360_v3 = vld [vmem:[%s353_s22 + $0x8] sm:$0xff]  ;;  %v1965_v9 = vld [vmem:[%s2419_s2 + $0x10] sm:$0xff]  ;;  %s357_s18 = scalar_lea.vmem %s2427_s10, %s1513_s11 }
   0xf   : > { %v361_v4 = vpack.c.bf16 %v360_v3, %v359_v2  ;;  %v1963_v13 = vld [vmem:[%s2419_s2] sm:$0xff]  ;;  %v1976_v14 = vld [vmem:[%s2419_s2 + $0x58] sm:$0xff]  ;;  %v1975_v15 = vld [vmem:[%s2419_s2 + $0x50] sm:$0xff] }
  0x10   : > { %464 = vmatpush.bf16.msra.mxu2 %v1970_v8  ;;  %v1974_v16 = vld [vmem:[%s2419_s2 + $0x48] sm:$0xff]  ;;  %v1973_v17 = vld [vmem:[%s2419_s2 + $0x40] sm:$0xff]  ;;  %v1984_v18 = vld [vmem:[%s2422_s5 + $0x38] sm:$0xff] }
  0x11   : > { %380 = vmatpush.bf16.msra.mxu0 %v361_v4  ;;  %414 = vmatpush.bf16.msra.mxu1 %v361_v4  ;;  %v1983_v28 = vld [vmem:[%s2422_s5 + $0x30] sm:$0xff]  ;;  %v1982_v29 = vld [vmem:[%s2422_s5 + $0x28] sm:$0xff]  ;;  %v1981_v30 = vld [vmem:[%s2422_s5 + $0x20] sm:$0xff] }
  0x12   : > { %505 = vmatpush.bf16.msra.mxu3 %v1965_v9  ;;  %v1980_v31 = vld [vmem:[%s2422_s5 + $0x18] sm:$0xff]  ;;  %v1979_v32 = vld [vmem:[%s2422_s5 + $0x10] sm:$0xff]  ;;  %v1978_v33 = vld [vmem:[%s2422_s5 + $0x8] sm:$0xff] }
  0x13   : > { %v1977_v34 = vld [vmem:[%s2422_s5] sm:$0xff]  ;;  %v1992_v55 = vld [vmem:[%s2422_s5 + $0x78] sm:$0xff]  ;;  %v1991_v57 = vld [vmem:[%s2422_s5 + $0x70] sm:$0xff] }
  0x14   : > { %1518 = vmatmul.msk.bf16.vlgmr.msra.gmra.mxu0 %vm369_vm0, %v1962_v5  ;;  %1525 = vmatmul.msk.bf16.vlgmr.msra.gmra.mxu1 %vm369_vm0, %v1967_v6  ;;  %v2045_v40 = vld [vmem:[%s2420_s3] ss:$0 sm:$0xff]  ;;  %v1601_v54 = vld [vmem:[%s2421_s4 + $0x4] sm:$0xf]  ;;  %v2000_v56 = vld [vmem:[%s2422_s5 + $0xb8] sm:$0xff] }
  0x15   : > { %532 = vmatpush.bf16.msrb.mxu0 %v361_v4  ;;  %465 = vmatpush.bf16.msra.mxu2 %v1969_v10  ;;  %v605_v53 = vld [vmem:[%s2421_s4] sm:$0xf]  ;;  %v1999_v58 = vld [vmem:[%s2422_s5 + $0xb0] sm:$0xff]  ;;  %v1990_v59 = vld [vmem:[%s2422_s5 + $0x68] sm:$0xff] }
  0x16   : > { %506 = vmatpush.bf16.msra.mxu3 %v1964_v11  ;;  %580 = vmatpush.bf16.msrb.mxu1 %v1976_v14  ;;  %v1998_v60 = vld [vmem:[%s2422_s5 + $0xa8] sm:$0xff]  ;;  %v1989_v61 = vld [vmem:[%s2422_s5 + $0x60] sm:$0xff]  ;;  %v1988_v63 = vld [vmem:[%s2422_s5 + $0x58] sm:$0xff] }
  0x17   : > { %v1683_v62 = vld [vmem:[%s2421_s4 + $0x8] sm:$0xf]  ;;  %v1987_v0 = vld [vmem:[%s2422_s5 + $0x50] sm:$0xff]  ;;  %v1733_v2 = vld [vmem:[%s2421_s4 + $0xc] sm:$0xf] }
  0x18   : > { %v1986_v1 = vld [vmem:[%s2422_s5 + $0x48] sm:$0xff]  ;;  %v1985_v3 = vld [vmem:[%s2422_s5 + $0x40] sm:$0xff]  ;;  %v1996_v5 = vld [vmem:[%s2422_s5 + $0x98] sm:$0xff] }
  0x19   : > { %466 = vmatpush.bf16.msra.mxu2 %v1968_v12  ;;  %723 = vmatpush.bf16.msra.mxu0 %v1992_v55  ;;  %v1997_v4 = vld [vmem:[%s2422_s5 + $0xa0] sm:$0xff]  ;;  %v2008_v6 = vld [vmem:[%s2422_s5 + $0xf8] sm:$0xff]  ;;  %v2007_v8 = vld [vmem:[%s2422_s5 + $0xf0] sm:$0xff] }
  0x1a   : > { %507 = vmatpush.bf16.msra.mxu3 %v1963_v13  ;;  %581 = vmatpush.bf16.msrb.mxu1 %v1975_v15  ;;  %v1994_v9 = vld [vmem:[%s2422_s5 + $0x88] sm:$0xff]  ;;  %v1993_v11 = vld [vmem:[%s2422_s5 + $0x80] sm:$0xff]  ;;  %v2004_v13 = vld [vmem:[%s2422_s5 + $0xd8] sm:$0xff] }
  0x1b   : > { %v2006_v10 = vld [vmem:[%s2422_s5 + $0xe8] sm:$0xff]  ;;  %v2005_v12 = vld [vmem:[%s2422_s5 + $0xe0] sm:$0xff]  ;;  %v2003_v14 = vld [vmem:[%s2422_s5 + $0xd0] sm:$0xff] }
  0x1c   : > { %v2002_v15 = vld [vmem:[%s2422_s5 + $0xc8] sm:$0xff] }
  0x1d   : > { %724 = vmatpush.bf16.msra.mxu0 %v1991_v57 }
  0x1e   : > { %582 = vmatpush.bf16.msrb.mxu1 %v1974_v16  ;;  %v2001_v16 = vld [vmem:[%s2422_s5 + $0xc0] sm:$0xff] }
  0x21   : > { %725 = vmatpush.bf16.msra.mxu0 %v1990_v59 }
  0x22   : > { %583 = vmatpush.bf16.msrb.mxu1 %v1973_v17 }
  0x24   : > { %1574 = vmatmul.msk.bf16.vlgmr.msrb.gmra.mxu0 %vm369_vm0, %v1972_v7  ;;  %v1995_v7 = vld [vmem:[%s2422_s5 + $0x90] sm:$0xff] }
  0x25   : > { %726 = vmatpush.bf16.msra.mxu0 %v1989_v61 }
  0x26   : > { %784 = vmatpush.bf16.msra.mxu1 %v1984_v18 }
  0x29   : > { %727 = vmatpush.bf16.msra.mxu0 %v1988_v63  ;;  %v1100_v63 = vld [vmem:[%s2424_s7] sm:$0x3] }
  0x2a   : > { %785 = vmatpush.bf16.msra.mxu1 %v1983_v28 }
  0x2d   : > { %728 = vmatpush.bf16.msra.mxu0 %v1987_v0  ;;  %v2023_v0 = vld [vmem:[%s2425_s8 + $0x30] sm:$0xff] }
  0x2e   : > { %786 = vmatpush.bf16.msra.mxu1 %v1982_v29 }
  0x31   : > { %729 = vmatpush.bf16.msra.mxu0 %v1986_v1  ;;  %v2022_v1 = vld [vmem:[%s2425_s8 + $0x28] sm:$0xff] }
  0x32   : > { %787 = vmatpush.bf16.msra.mxu1 %v1981_v30 }
  0x35   : > { %730 = vmatpush.bf16.msra.mxu0 %v1985_v3  ;;  %v1878_v3 = vld [vmem:[%s2424_s7 + $0x4] sm:$0x3] }
  0x36   : > { %788 = vmatpush.bf16.msra.mxu1 %v1980_v31 }
  0x39   : > { %979 = vmatpush.bf16.msrb.mxu0 %v2008_v6  ;;  %v2018_v6 = vld [vmem:[%s2425_s8 + $0x8] sm:$0xff] }
  0x3a   : > { %789 = vmatpush.bf16.msra.mxu1 %v1979_v32 }
  0x3d   : > { %980 = vmatpush.bf16.msrb.mxu0 %v2007_v8  ;;  %v2017_v8 = vld [vmem:[%s2425_s8] sm:$0xff] }
  0x3e   : > { %790 = vmatpush.bf16.msra.mxu1 %v1978_v33  ;;  %v2013_v33 = vld [vmem:[%s2422_s5 + $0x120] sm:$0xff] }
  0x41   : > { %981 = vmatpush.bf16.msrb.mxu0 %v2006_v10  ;;  %v2026_v10 = vld [vmem:[%s2425_s8 + $0x48] sm:$0xff] }
  0x42   : > { %791 = vmatpush.bf16.msra.mxu1 %v1977_v34  ;;  %v2012_v34 = vld [vmem:[%s2422_s5 + $0x118] sm:$0xff] }
  0x45   : > { %982 = vmatpush.bf16.msrb.mxu0 %v2005_v12  ;;  %v2025_v12 = vld [vmem:[%s2425_s8 + $0x40] sm:$0xff] }
  0x49   : > { %983 = vmatpush.bf16.msrb.mxu0 %v2004_v13 }
  0x4d   : > { %984 = vmatpush.bf16.msrb.mxu0 %v2003_v14 }
  0x51   : > { %985 = vmatpush.bf16.msrb.mxu0 %v2002_v15 }
  0x55   : > { %986 = vmatpush.bf16.msrb.mxu0 %v2001_v16 }
  0x91   : > { %v382_v19 = vpop.f32.mrf.mxu0  ;;  %v416_v20 = vpop.f32.mrf.mxu1 }
  0x99   : > { %v384_v21 = vpop.f32.mrf.mxu0  ;;  %v418_v22 = vpop.f32.mrf.mxu1 }
  0x9a   : > { %v387_v23 = vpack.c.bf16 %v384_v21, %v382_v19  ;;  %v421_v24 = vpack.c.bf16 %v418_v22, %v416_v20  ;;  %v2016_v21 = vld [vmem:[%s2422_s5 + $0x138] sm:$0xff]  ;;  %v2015_v22 = vld [vmem:[%s2422_s5 + $0x130] sm:$0xff] }
  0x9c   : > { %1550 = vmatmul.msk.bf16.vlgmr.msra.gmra.mxu2 %vm455_vm1, %v421_v24  ;;  %1567 = vmatmul.msk.bf16.vlgmr.msra.gmra.mxu3 %vm455_vm1, %v387_v23 }
  0xa1   : > { %v534_v25 = vpop.f32.mrf.mxu0 }
  0xa9   : > { %v536_v26 = vpop.f32.mrf.mxu0 }
  0xaa   : > { %v539_v27 = vpack.c.bf16 %v536_v26, %v534_v25  ;;  %v2014_v25 = vld [vmem:[%s2422_s5 + $0x128] sm:$0xff] }
  0xac   : > { %1599 = vmatmul.msk.bf16.vlgmr.msrb.gmra.mxu1 %vm455_vm1, %v539_v27  ;;  %v1783_v27 = vld [vmem:[%s2421_s4 + $0x10] sm:$0xf] }
 0x11f   : > { %v468_v35 = vpop.f32.mrf.mxu2  ;;  %v509_v36 = vpop.f32.mrf.mxu3 }
 0x120   : > { %v510_v38 = vadd.f32 %v509_v36, %v468_v35  ;;  %v2011_v35 = vld [vmem:[%s2422_s5 + $0x110] sm:$0xff]  ;;  %v2010_v36 = vld [vmem:[%s2422_s5 + $0x108] sm:$0xff] }
 0x127   : > { %v470_v41 = vpop.f32.mrf.mxu2  ;;  %v511_v42 = vpop.f32.mrf.mxu3 }
 0x128   : > { %v512_v43 = vadd.f32 %v511_v42, %v470_v41 }
 0x129   : > { %v585_v37 = vpop.f32.mrf.mxu1 }
 0x12a   : > { %v590_v39 = vadd.f32 %v585_v37, %v510_v38  ;;  %v2009_v37 = vld [vmem:[%s2422_s5 + $0x100] sm:$0xff] }
 0x12c   : > { %v596_v44 = vadd.f32 %v2045_v40, %v590_v39 }
 0x12e   : > { %v600_v47 = vmul.f32 0.01, %v596_v44  ;;  %vm598_vm2 = vcmp.gt.f32.partialorder %v596_v44, 0.0 }
 0x130   : > { %v602_v50 = vsel %vm598_vm2, %v596_v44, %v600_v47 }
 0x131   : > { %v587_v45 = vpop.f32.mrf.mxu1 }
 0x132   : > { %v591_v46 = vadd.f32 %v587_v45, %v512_v43 }
 0x134   : > { %v597_v48 = vadd.f32 %v2045_v40, %v591_v46 }
 0x136   : > { %vm599_vm3 = vcmp.gt.f32.partialorder %v597_v48, 0.0  ;;  %v601_v49 = vmul.f32 0.01, %v597_v48 }
 0x138   : > { %v603_v51 = vsel %vm599_vm3, %v597_v48, %v601_v49 }
 0x139   : > { %v604_v52 = vpack.c.bf16 %v603_v51, %v602_v50 }
 0x13b   : > { %616 = vmatpush.bf16.msrb.mxu2 %v604_v52  ;;  %651 = vmatpush.bf16.msrb.mxu3 %v604_v52 }
 0x13c   : > { %1005 = vmatpush.bf16.msrb.mxu1 %v604_v52 }
 0x13e   : > { %1600 = vmatmul.msk.bf16.vlgmr.msrb.gmra.mxu2 %vm369_vm0, %v605_v53  ;;  %1602 = vmatmul.msk.bf16.vlgmr.msrb.gmra.mxu3 %vm369_vm0, %v1601_v54 }
 0x13f   : > { %809 = vmatpush.bf16.msra.mxu2 %v604_v52  ;;  %881 = vmatpush.bf16.msra.mxu3 %v2000_v56 }
 0x143   : > { %907 = vmatpush.bf16.msrb.mxu2 %v604_v52  ;;  %882 = vmatpush.bf16.msra.mxu3 %v1999_v58  ;;  %v2046_v52 = vld [vmem:[%s2423_s6] ss:$0 sm:$0xff] }
 0x147   : > { %883 = vmatpush.bf16.msra.mxu3 %v1998_v60  ;;  %v2024_v60 = vld [vmem:[%s2425_s8 + $0x38] sm:$0xff] }
 0x14b   : > { %884 = vmatpush.bf16.msra.mxu3 %v1997_v4  ;;  %v2020_v4 = vld [vmem:[%s2425_s8 + $0x18] sm:$0xff] }
 0x14e   : > { %1684 = vmatmul.msk.bf16.vlgmr.msra.gmra.mxu2 %vm369_vm0, %v1683_v62  ;;  %v1834_v62 = vld [vmem:[%s2424_s7 + $0x2] sm:$0x3] }
 0x14f   : > { %885 = vmatpush.bf16.msra.mxu3 %v1996_v5  ;;  %1077 = vmatpush.bf16.msra.mxu2 %v2016_v21  ;;  %v2019_v5 = vld [vmem:[%s2425_s8 + $0x10] sm:$0xff] }
 0x153   : > { %886 = vmatpush.bf16.msra.mxu3 %v1995_v7  ;;  %1078 = vmatpush.bf16.msra.mxu2 %v2015_v22  ;;  %v2028_v7 = vld [vmem:[%s2425_s8 + $0x58] sm:$0xff] }
 0x157   : > { %887 = vmatpush.bf16.msra.mxu3 %v1994_v9  ;;  %1079 = vmatpush.bf16.msra.mxu2 %v2014_v25  ;;  %v2027_v9 = vld [vmem:[%s2425_s8 + $0x50] sm:$0xff]  ;;  %v2034_v25 = vld [vmem:[%s2425_s8 + $0x88] sm:$0xff] }
 0x15b   : > { %888 = vmatpush.bf16.msra.mxu3 %v1993_v11  ;;  %1080 = vmatpush.bf16.msra.mxu2 %v2013_v33  ;;  %v1932_v11 = vld [vmem:[%s2424_s7 + $0x8] sm:$0x3]  ;;  %v2029_v33 = vld [vmem:[%s2425_s8 + $0x60] sm:$0xff] }
 0x15e   : > { %1734 = vmatmul.msk.bf16.vlgmr.msrb.gmra.mxu2 %vm369_vm0, %v1733_v2  ;;  %v2021_v2 = vld [vmem:[%s2425_s8 + $0x20] sm:$0xff] }
 0x15f   : > { %1081 = vmatpush.bf16.msra.mxu2 %v2012_v34 }
 0x163   : > { %1082 = vmatpush.bf16.msra.mxu2 %v2011_v35 }
 0x167   : > { %1083 = vmatpush.bf16.msra.mxu2 %v2010_v36 }
 0x16b   : > { %1084 = vmatpush.bf16.msra.mxu2 %v2009_v37 }
 0x16f   : > { %1298 = vmatpush.bf16.msrb.mxu2 %v2028_v7 }
 0x173   : > { %1299 = vmatpush.bf16.msrb.mxu2 %v2027_v9 }
 0x177   : > { %1300 = vmatpush.bf16.msrb.mxu2 %v2026_v10 }
 0x17b   : > { %1301 = vmatpush.bf16.msrb.mxu2 %v2025_v12 }
 0x1c1   : > { %v618_v17 = vpop.f32.mrf.mxu2  ;;  %v653_v18 = vpop.f32.mrf.mxu3 }
 0x1c2   : > { %v622_v19 = vpack.c.bf16 %v618_v17, %v618_v17  ;;  %v657_v20 = vpack.c.bf16 %v653_v18, %v653_v18 }
 0x1c4   : > { %731 = vmatmul.bf16.vlgmr.msra.gmra.mxu0 %v657_v20  ;;  %792 = vmatmul.bf16.vlgmr.msra.gmra.mxu1 %v622_v19  ;;  %v1905_v20 = vld [vmem:[%s2424_s7 + $0x6] sm:$0x3] }
 0x1c5   : > { %1230 = vmatpush.bf16.msra.mxu0 %v2020_v4 }
 0x1c9   : > { %v620_v23 = vpop.f32.mrf.mxu2  ;;  %v655_v24 = vpop.f32.mrf.mxu3  ;;  %1231 = vmatpush.bf16.msra.mxu0 %v2019_v5 }
 0x1ca   : > { %v2036_v23 = vld [vmem:[%s2425_s8 + $0x98] sm:$0xff]  ;;  %v2035_v24 = vld [vmem:[%s2425_s8 + $0x90] sm:$0xff] }
 0x1cd   : > { %1232 = vmatpush.bf16.msra.mxu0 %v2018_v6 }
 0x1d1   : > { %v811_v26 = vpop.f32.mrf.mxu2  ;;  %1233 = vmatpush.bf16.msra.mxu0 %v2017_v8 }
 0x1d2   : > { %v815_v28 = vpack.c.bf16 %v811_v26, %v811_v26  ;;  %v2032_v26 = vld [vmem:[%s2425_s8 + $0x78] sm:$0xff] }
 0x1d4   : > { %889 = vmatmul.bf16.vlgmr.msra.gmra.mxu3 %v815_v28  ;;  %1784 = vmatmul.msk.bf16.vlgmr.msrb.gmra.mxu1 %vm369_vm0, %v1783_v27  ;;  %v2033_v27 = vld [vmem:[%s2425_s8 + $0x80] sm:$0xff] }
 0x1d9   : > { %v813_v29 = vpop.f32.mrf.mxu2 }
 0x1e1   : > { %v909_v30 = vpop.f32.mrf.mxu2 }
 0x1e2   : > { %v913_v31 = vpack.c.bf16 %v909_v30, %v909_v30  ;;  %v2031_v30 = vld [vmem:[%s2425_s8 + $0x70] sm:$0xff] }
 0x1e4   : > { %987 = vmatmul.bf16.vlgmr.msrb.gmra.mxu0 %v913_v31  ;;  %v2030_v31 = vld [vmem:[%s2425_s8 + $0x68] sm:$0xff] }
 0x1e5   : > { %1367 = vmatpush.bf16.msrb.mxu0 %v2032_v26 }
 0x1e9   : > { %v911_v32 = vpop.f32.mrf.mxu2  ;;  %1368 = vmatpush.bf16.msrb.mxu0 %v2031_v30 }
 0x1ed   : > { %1369 = vmatpush.bf16.msrb.mxu0 %v2030_v31 }
 0x1f1   : > { %1370 = vmatpush.bf16.msrb.mxu0 %v2029_v33 }
 0x241   : > { %v732_v38 = vpop.f32.mrf.mxu0  ;;  %v793_v39 = vpop.f32.mrf.mxu1 }
 0x242   : > { %v794_v40 = vadd.f32 %v793_v39, %v732_v38 }
 0x249   : > { %v795_v41 = vpop.f32.mrf.mxu1  ;;  %v734_v42 = vpop.f32.mrf.mxu0 }
 0x251   : > { %v1007_v43 = vpop.f32.mrf.mxu1 }
 0x252   : > { %v1011_v44 = vpack.c.bf16 %v1007_v43, %v1007_v43 }
 0x254   : > { %1085 = vmatmul.bf16.vlgmr.msra.gmra.mxu2 %v1011_v44 }
 0x255   : > { %1436 = vmatpush.bf16.msra.mxu2 %v2036_v23 }
 0x257   : > { %v890_v45 = vpop.f32.mrf.mxu3 }
 0x258   : > { %v894_v46 = vadd.f32 %v890_v45, %v794_v40 }
 0x259   : > { %v1009_v47 = vpop.f32.mrf.mxu1  ;;  %1437 = vmatpush.bf16.msra.mxu2 %v2035_v24 }
 0x25d   : > { %1438 = vmatpush.bf16.msra.mxu2 %v2034_v25 }
 0x25f   : > { %v892_v48 = vpop.f32.mrf.mxu3 }
 0x261   : > { %v988_v49 = vpop.f32.mrf.mxu0  ;;  %1439 = vmatpush.bf16.msra.mxu2 %v2033_v27 }
 0x262   : > { %v992_v50 = vadd.f32 %v988_v49, %v894_v46  ;;  %v2047_v49 = vld [vmem:[%s2426_s9] ss:$0 sm:$0xff] }
 0x269   : > { %v990_v51 = vpop.f32.mrf.mxu0 }
 0x2d7   : > { %v1086_v53 = vpop.f32.mrf.mxu2 }
 0x2d8   : > { %v1090_v54 = vadd.f32 %v1086_v53, %v992_v50 }
 0x2da   : > { %v1095_v55 = vadd.f32 %v2046_v52, %v1090_v54 }
 0x2dc   : > { %vm1096_vm4 = vcmp.gt.f32.partialorder %v1095_v55, 0.0  ;;  %v1097_v56 = vmul.f32 0.01, %v1095_v55 }
 0x2de   : > { %v1098_v57 = vsel %vm1096_vm4, %v1095_v55, %v1097_v56 }
 0x2df   : > { %v1099_v58 = vpack.c.bf16 %v1098_v57, %v1098_v57  ;;  %v1088_v59 = vpop.f32.mrf.mxu2 }
 0x2e1   : > { %v1107_v61 = vsel %vm1105_vm5, %v1099_v58, 0 }
 0x2e2   : > { %1116 = vmatpush.bf16.msrb.mxu3 %v1107_v61  ;;  %1143 = vmatpush.bf16.msra.mxu1 %v1107_v61 }
 0x2e5   : > { %1835 = vmatmul.msk.bf16.vlgmr.msra.gmra.mxu1 %vm1101_vm6, %v1834_v62  ;;  %1833 = vmatmul.msk.bf16.vlgmr.msrb.gmra.mxu3 %vm1101_vm6, %v1100_v63 }
 0x2e6   : > { %1190 = vmatpush.bf16.msra.mxu3 %v2024_v60  ;;  %1251 = vmatpush.bf16.msrb.mxu1 %v1107_v61 }
 0x2ea   : > { %1389 = vmatpush.bf16.msra.mxu1 %v1107_v61  ;;  %1191 = vmatpush.bf16.msra.mxu3 %v2023_v0 }
 0x2ee   : > { %1192 = vmatpush.bf16.msra.mxu3 %v2022_v1 }
 0x2f2   : > { %1193 = vmatpush.bf16.msra.mxu3 %v2021_v2 }
 0x2f5   : > { %1879 = vmatmul.msk.bf16.vlgmr.msrb.gmra.mxu1 %vm1101_vm6, %v1878_v3 }
 0x2f6   : > { %1320 = vmatpush.bf16.msrb.mxu3 %v1107_v61 }
 0x305   : > { %1933 = vmatmul.msk.bf16.vlgmr.msra.gmra.mxu1 %vm1101_vm6, %v1932_v11 }
 0x362   : > { %v1145_v13 = vpop.f32.mrf.mxu1 }
 0x363   : > { %v1149_v14 = vpack.c.bf16 %v1145_v13, %v1145_v13 }
 0x365   : > { %1860 = vmatmul.msk.bf16.vlgmr.msra.gmra.mxu3 %vm455_vm1, %v1149_v14 }
 0x368   : > { %v1118_v15 = vpop.f32.mrf.mxu3 }
 0x369   : > { %v1122_v16 = vpack.c.bf16 %v1118_v15, %v1118_v15 }
 0x36a   : > { %v1147_v17 = vpop.f32.mrf.mxu1 }
 0x36b   : > { %1877 = vmatmul.msk.bf16.vlgmr.msra.gmra.mxu0 %vm455_vm1, %v1122_v16 }
 0x370   : > { %v1120_v18 = vpop.f32.mrf.mxu3 }
 0x372   : > { %v1253_v19 = vpop.f32.mrf.mxu1 }
 0x373   : > { %v1257_v21 = vpack.c.bf16 %v1253_v19, %v1253_v19 }
 0x375   : > { %1904 = vmatmul.msk.bf16.vlgmr.msrb.gmra.mxu2 %vm455_vm1, %v1257_v21  ;;  %1906 = vmatmul.msk.bf16.vlgmr.msrb.gmra.mxu3 %vm1101_vm6, %v1905_v20 }
 0x37a   : > { %v1255_v22 = vpop.f32.mrf.mxu1 }
 0x382   : > { %v1391_v28 = vpop.f32.mrf.mxu1 }
 0x383   : > { %v1395_v29 = vpack.c.bf16 %v1391_v28, %v1391_v28 }
 0x385   : > { %1958 = vmatmul.msk.bf16.vlgmr.msra.gmra.mxu2 %vm455_vm1, %v1395_v29 }
 0x38a   : > { %v1393_v32 = vpop.f32.mrf.mxu1 }
 0x3e8   : > { %v1195_v34 = vpop.f32.mrf.mxu3  ;;  %v1235_v35 = vpop.f32.mrf.mxu0 }
 0x3e9   : > { %v1236_v36 = vadd.f32 %v1235_v35, %v1195_v34 }
 0x3f0   : > { %v1197_v37 = vpop.f32.mrf.mxu3  ;;  %v1237_v38 = vpop.f32.mrf.mxu0 }
 0x3f8   : > { %v1303_v39 = vpop.f32.mrf.mxu2  ;;  %v1322_v40 = vpop.f32.mrf.mxu3 }
 0x3f9   : > { %v1307_v41 = vadd.f32 %v1303_v39, %v1236_v36  ;;  %v1326_v42 = vpack.c.bf16 %v1322_v40, %v1322_v40 }
 0x3fb   : > { %1931 = vmatmul.msk.bf16.vlgmr.msrb.gmra.mxu0 %vm455_vm1, %v1326_v42 }
 0x400   : > { %v1324_v43 = vpop.f32.mrf.mxu3  ;;  %v1305_v44 = vpop.f32.mrf.mxu2 }
 0x408   : > { %v1441_v45 = vpop.f32.mrf.mxu2 }
 0x410   : > { %v1443_v46 = vpop.f32.mrf.mxu2 }
 0x478   : > { %v1372_v47 = vpop.f32.mrf.mxu0 }
 0x479   : > { %v1376_v48 = vadd.f32 %v1372_v47, %v1307_v41 }
 0x47b   : > { %v1445_v50 = vadd.f32 %v1441_v45, %v1376_v48 }
 0x47d   : > { %v1450_v51 = vadd.f32 %v2047_v49, %v1445_v50 }
 0x47f   : > { %1452 = vst.msk [vmem:[%s357_s18] sm:$0xf] %vm1451_vm7, %v1450_v51 }
 0x480   : > { %v1374_v52 = vpop.f32.mrf.mxu0 }
 0x481 PF: > { %s20_s13 = sadd.s32 1, %s2054_s13  }
 0x482   : > { %p17_p4 = scmp.ge.s32.totalorder %s20_s13, 4  }
 0x484   :  { %19 = sbr.rel (!%p17_p4) target bundleno = 1 (0x1), region = 110 }

</bundles_post_ra>
